<compile_context>
chip_gen: v7x
topology: tpu7x:2x2x1
jax: 0.10.0
libtpu: 0.0.40
codegen_flags: <defaults>
</compile_context>

<pallas_src>
import jax
import jax.numpy as jnp
import numpy as np
from jax.experimental import pallas as pl
from jax.experimental.pallas import tpu as pltpu

# ----- configuration of the wrapped sequential -----
B, C_IN, H, W = 2, 4, 16, 16            # batch, channels, freq, time
C_OUT = 8
KH = KW = 3                             # Conv2d kernel
SH = SW = 2                             # stride
PH = PW = 1                             # padding
DH = DW = 1                             # dilation
H_OUT = (H + 2 * PH - DH * (KH - 1) - 1) // SH + 1
W_OUT = (W + 2 * PW - DW * (KW - 1) - 1) // SW + 1
K = C_IN * KH * KW                      # 36
K_AUG = K + 1                           # 37: extra "ones" row carries the folded bias
P = H_OUT * W_OUT                       # 64 output positions per batch (lane axis)
BN_EPS = 1e-5
HT_MIN, HT_MAX = 0.0, 20.0


def _maskconv_kernel(cols_ref, w_ref, keep_ref, o_ref):
    """Fused Conv2d(+bias)+BN(eval)+Hardtanh+time-mask.

    cols_ref: (B, K_AUG, P) f32  im2col patches + trailing ones row (bias lane)
    w_ref:    (C_OUT, K_AUG) f32 BN-scaled conv weight | folded-bias column
    keep_ref: (B, 1, P)     f32  0/1 time-keep mask per output position
    o_ref:    (B, C_OUT, P) f32  NCHW-compatible: reshapes to (B,C,H,W) for free
    """
    w = w_ref[...]                                   # hoisted: (C_OUT, K_AUG)
    for b in range(B):                               # B=2: static unroll, two MXU matmuls
        # Conv + conv-bias + BN(eval) in one MXU matmul (bias via the ones row).
        y = jnp.dot(w, cols_ref[b], preferred_element_type=jnp.float32)   # (C_OUT, P)
        # Hardtanh(0, 20), then the single (equivalent) time mask.
        y = jnp.clip(y, HT_MIN, HT_MAX) * keep_ref[b]
        o_ref[b] = y.astype(o_ref.dtype)


def get_seq_lens_conv(seq_lens):
    """MaskConv.get_seq_lens for the Conv2d module (width/time axis params)."""
    sl = seq_lens + 2 * PW - DW * (KW - 1) - 1
    sl = (sl.astype(jnp.float32) / float(SW)).astype(jnp.int32) + 1   # .float()/stride, .int(), +1
    return sl


def _im2col(x_pad):
    """(B, C_in, H+2p, W+2p) -> (B, K, P); K = ci*KH*KW + kh*KW + kw, P = h*W_out + w."""
    patches = []
    for kh in range(KH):
        for kw in range(KW):
            patches.append(
                x_pad[:, :, kh:kh + SH * H_OUT:SH, kw:kw + SW * W_OUT:SW])  # (B, C_in, H_out, W_out)
    cols = jnp.stack(patches, axis=2)                 # (B, C_in, KH*KW, H_out, W_out)
    return cols.reshape(B, K, P)


@jax.jit
def mask_conv_forward(x, seq_lens, w, conv_b, gamma, beta, rmean, rvar):
    # ---- glue: pad + im2col (see header note / TODO for the real-size in-kernel plan) ----
    x_pad = jnp.pad(x.astype(jnp.float32), ((0, 0), (0, 0), (PH, PH), (PW, PW)))
    cols = _im2col(x_pad)                                                  # (B, K, P)
    cols_aug = jnp.concatenate(
        [cols, jnp.ones((B, 1, P), jnp.float32)], axis=1)                  # (B, K_AUG, P)

    # Fold BN(eval) scale into the weight and all biases into one extra weight column.
    bn_scale = (gamma / jnp.sqrt(rvar + BN_EPS)).astype(jnp.float32)       # (C_OUT,)
    w_eff = bn_scale[:, None] * w.reshape(C_OUT, K).astype(jnp.float32)    # (C_OUT, K)
    bias_eff = bn_scale * conv_b + (beta - rmean * bn_scale)               # (C_OUT,)
    w_aug = jnp.concatenate([w_eff, bias_eff[:, None]], axis=1)            # (C_OUT, K_AUG)

    # Updated seq lengths and the single equivalent time mask (eval-mode BN makes
    # the three per-module masked_fill's collapse to one post-clip multiply).
    seq_new = get_seq_lens_conv(seq_lens.astype(jnp.int32))                # (B,)
    t = jnp.tile(jnp.arange(W_OUT, dtype=jnp.int32), H_OUT)                # (P,) time of each position
    keep = (t[None, :] < seq_new[:, None]).astype(jnp.float32)[:, None, :]  # (B, 1, P)

    out_flat = pl.pallas_call(
        _maskconv_kernel,
        out_shape=jax.ShapeDtypeStruct((B, C_OUT, P), jnp.float32),
        in_specs=[
            pl.BlockSpec(memory_space=pltpu.MemorySpace.VMEM),   # patch slab (+ ones row)
            pl.BlockSpec(memory_space=pltpu.MemorySpace.VMEM),   # folded weight | bias
            pl.BlockSpec(memory_space=pltpu.MemorySpace.VMEM),   # time-keep mask
        ],
        out_specs=pl.BlockSpec(memory_space=pltpu.MemorySpace.VMEM),
    )(cols_aug, w_aug, keep)

    # Pure reshape — no transpose, no extra HBM pass (batch already on the leading axis).
    out = out_flat.reshape(B, C_OUT, H_OUT, W_OUT)
    return out, seq_new


def reference(x, seq_lens, w, conv_b, gamma, beta, rmean, rvar):
    """Pure-JAX reference matching the PyTorch forward (BN in eval mode)."""
    y = jax.lax.conv_general_dilated(
        x.astype(jnp.float32), w.astype(jnp.float32),
        window_strides=(SH, SW), padding=((PH, PH), (PW, PW)),
        dimension_numbers=("NCHW", "OIHW", "NCHW"))
    y = y + conv_b.reshape(1, C_OUT, 1, 1)
    seq_new = get_seq_lens_conv(seq_lens.astype(jnp.int32))
    t = jnp.arange(W_OUT, dtype=jnp.int32)
    keep = t[None, None, None, :] < seq_new[:, None, None, None]
    zero = jnp.zeros_like(y)
    y = jnp.where(keep, y, zero)
    y = (y - rmean.reshape(1, -1, 1, 1)) / jnp.sqrt(rvar.reshape(1, -1, 1, 1) + BN_EPS)
    y = y * gamma.reshape(1, -1, 1, 1) + beta.reshape(1, -1, 1, 1)
    y = jnp.where(keep, y, zero)
    y = jnp.clip(y, HT_MIN, HT_MAX)
    y = jnp.where(keep, y, zero)
    return y, seq_new


if __name__ == "__main__":
    key = jax.random.PRNGKey(0)
    k1, k2, k3, k4, k5 = jax.random.split(key, 5)
    # deterministic inputs / parameters (synthetic — no checkpoint load)
    x = jax.random.normal(k1, (B, C_IN, H, W), dtype=jnp.float32)
    seq_lens = jnp.array([16, 11], dtype=jnp.int32)                      # time lengths (W axis)
    w = 0.1 * jax.random.normal(k2, (C_OUT, C_IN, KH, KW), dtype=jnp.float32)
    conv_b = 0.1 * jax.random.normal(k3, (C_OUT,), dtype=jnp.float32)
    gamma = 1.0 + 0.1 * jax.random.normal(k4, (C_OUT,), dtype=jnp.float32)
    beta = 0.1 * jax.random.normal(k5, (C_OUT,), dtype=jnp.float32)
    rmean = jnp.linspace(-0.2, 0.2, C_OUT, dtype=jnp.float32)            # BN running stats (eval)
    rvar = jnp.linspace(0.5, 1.5, C_OUT, dtype=jnp.float32)

    out, seq_out = mask_conv_forward(x, seq_lens, w, conv_b, gamma, beta, rmean, rvar)
    out = jax.block_until_ready(out)

    ref_out, ref_seq = reference(x, seq_lens, w, conv_b, gamma, beta, rmean, rvar)
    np.testing.assert_allclose(np.asarray(out), np.asarray(ref_out), rtol=1e-5, atol=1e-5)
    np.testing.assert_array_equal(np.asarray(seq_out), np.asarray(ref_seq))
    print("KERNEL_OK")
</pallas_src>

<mosaic_0001>
module attributes {stable_mosaic.version = 11 : i64} {
  func.func @_maskconv_kernel(%arg0: memref<2x37x64xf32, #tpu.memory_space<vmem>>, %arg1: memref<8x37xf32, #tpu.memory_space<vmem>>, %arg2: memref<2x1x64xf32, #tpu.memory_space<vmem>>, %arg3: memref<2x8x64xf32, #tpu.memory_space<vmem>>) attributes {dimension_semantics = [], scalar_prefetch = 0 : i64, scratch_operands = 0 : i64, tpu.core_type = #tpu.core_type<tc>} {
    %c0 = arith.constant 0 : index
    %c0_0 = arith.constant 0 : index
    %0 = vector.load %arg1[%c0, %c0_0] : memref<8x37xf32, #tpu.memory_space<vmem>>, vector<8x37xf32>
    %c0_1 = arith.constant 0 : index
    %c0_2 = arith.constant 0 : index
    %c0_3 = arith.constant 0 : index
    %1 = vector.load %arg0[%c0_1, %c0_2, %c0_3] : memref<2x37x64xf32, #tpu.memory_space<vmem>>, vector<1x37x64xf32>
    %2 = vector.shape_cast %1 : vector<1x37x64xf32> to vector<37x64xf32>
    %cst = arith.constant dense<0.000000e+00> : vector<8x64xf32>
    %3 = tpu.matmul %0, %2, %cst {dimension_numbers = #tpu.dot_dimension_numbers<[1], [0], [0], [1], [0, 0, 1, 1], [], []>} : vector<8x37xf32>, vector<37x64xf32>, vector<8x64xf32> -> vector<8x64xf32>
    %cst_4 = arith.constant 0.000000e+00 : f32
    %cst_5 = arith.constant 2.000000e+01 : f32
    %4 = vector.broadcast %cst_4 : f32 to vector<8x64xf32>
    %5 = arith.maximumf %4, %3 : vector<8x64xf32>
    %6 = vector.broadcast %cst_5 : f32 to vector<8x64xf32>
    %7 = arith.minimumf %6, %5 : vector<8x64xf32>
    %c0_6 = arith.constant 0 : index
    %c0_7 = arith.constant 0 : index
    %c0_8 = arith.constant 0 : index
    %8 = vector.load %arg2[%c0_6, %c0_7, %c0_8] : memref<2x1x64xf32, #tpu.memory_space<vmem>>, vector<1x1x64xf32>
    %9 = vector.shape_cast %8 : vector<1x1x64xf32> to vector<1x64xf32>
    %10 = vector.broadcast %9 : vector<1x64xf32> to vector<8x64xf32>
    %11 = arith.mulf %7, %10 : vector<8x64xf32>
    %c0_9 = arith.constant 0 : index
    %c0_10 = arith.constant 0 : index
    %c0_11 = arith.constant 0 : index
    %12 = vector.load %arg3[%c0_9, %c0_10, %c0_11] : memref<2x8x64xf32, #tpu.memory_space<vmem>>, vector<1x8x64xf32>
    %13 = vector.shape_cast %12 : vector<1x8x64xf32> to vector<8x64xf32>
    %14 = vector.shape_cast %11 : vector<8x64xf32> to vector<1x8x64xf32>
    tpu.vector_store %arg3[%c0_9, %c0_10, %c0_11], %14 {strides = array<i32>} : memref<2x8x64xf32, #tpu.memory_space<vmem>>, vector<1x8x64xf32>,
    %c1 = arith.constant 1 : index
    %c0_12 = arith.constant 0 : index
    %c0_13 = arith.constant 0 : index
    %15 = vector.load %arg0[%c1, %c0_12, %c0_13] : memref<2x37x64xf32, #tpu.memory_space<vmem>>, vector<1x37x64xf32>
    %16 = vector.shape_cast %15 : vector<1x37x64xf32> to vector<37x64xf32>
    %cst_14 = arith.constant dense<0.000000e+00> : vector<8x64xf32>
    %17 = tpu.matmul %0, %16, %cst_14 {dimension_numbers = #tpu.dot_dimension_numbers<[1], [0], [0], [1], [0, 0, 1, 1], [], []>} : vector<8x37xf32>, vector<37x64xf32>, vector<8x64xf32> -> vector<8x64xf32>
    %cst_15 = arith.constant 0.000000e+00 : f32
    %cst_16 = arith.constant 2.000000e+01 : f32
    %18 = vector.broadcast %cst_15 : f32 to vector<8x64xf32>
    %19 = arith.maximumf %18, %17 : vector<8x64xf32>
    %20 = vector.broadcast %cst_16 : f32 to vector<8x64xf32>
    %21 = arith.minimumf %20, %19 : vector<8x64xf32>
    %c1_17 = arith.constant 1 : index
    %c0_18 = arith.constant 0 : index
    %c0_19 = arith.constant 0 : index
    %22 = vector.load %arg2[%c1_17, %c0_18, %c0_19] : memref<2x1x64xf32, #tpu.memory_space<vmem>>, vector<1x1x64xf32>
    %23 = vector.shape_cast %22 : vector<1x1x64xf32> to vector<1x64xf32>
    %24 = vector.broadcast %23 : vector<1x64xf32> to vector<8x64xf32>
    %25 = arith.mulf %21, %24 : vector<8x64xf32>
    %c1_20 = arith.constant 1 : index
    %c0_21 = arith.constant 0 : index
    %c0_22 = arith.constant 0 : index
    %26 = vector.load %arg3[%c1_20, %c0_21, %c0_22] : memref<2x8x64xf32, #tpu.memory_space<vmem>>, vector<1x8x64xf32>
    %27 = vector.shape_cast %26 : vector<1x8x64xf32> to vector<8x64xf32>
    %28 = vector.shape_cast %25 : vector<8x64xf32> to vector<1x8x64xf32>
    tpu.vector_store %arg3[%c1_20, %c0_21, %c0_22], %28 {strides = array<i32>} : memref<2x8x64xf32, #tpu.memory_space<vmem>>, vector<1x8x64xf32>,
    return
  }
}

</mosaic_0001>

<bundles_post_ra>
// kernel: mask_conv_forward.1
= control target key start
LH: loop header
LB: loop body
LE: loop exit
PB: predicated region body
PF: predicated region fallthrough
CT: control target
= control target key end

     0   :  { %v272_v0 = vmov 0.0|0.0   ;;  %vm273_vm0 = vmmov 0   ;;  %v274_v8 = vmov 0.0   ;;  %vm24_vm1 = vcmask 1044480   ;;  %s340_s0 = inlined_call_operand.vmem [shape: f32[2,37,64], index: 0, kind: input, shape index: {}]   ;;  %s341_s1 = inlined_call_operand.vmem [shape: f32[8,37], index: 1, kind: input, shape index: {}]   ;;  %s342_s2 = inlined_call_operand.vmem [shape: f32[2,1,64], index: 2, kind: input, shape index: {}]   ;;  %s343_s3 = inlined_call_operand.vmem [shape: f32[2,8,64], index: 3, kind: output, shape index: {}]  }
   0x1   :  { %257 = vmatprep.subr.bf16.mxu0 %v272_v0  ;;  %263 = vmatprep.subr.bf16.mxu1 %v272_v0  ;;  %v15_v1 = vld [vmem:[%s340_s0] sm:$0xff]  ;;  %v16_v2 = vld [vmem:[%s340_s0 + $0x8] sm:$0xff]  ;;  %v210_v5 = vld [vmem:[%s340_s0 + $0x30] sm:$0xff]  ;;  %vm20_vm2 = vcmask 302080   ;;  %vm108_vm3 = vcmask 523264  }
   0x2   :  { %v209_v3 = vld [vmem:[%s340_s0 + $0x28] sm:$0xff]  ;;  %v258_v4 = vpack.c.bf16 %v16_v2, %v15_v1  ;;  %v17_v6 = vld [vmem:[%s340_s0 + $0x10] sm:$0xff]  ;;  %v18_v7 = vld [vmem:[%s340_s0 + $0x18] sm:$0xff]  ;;  %241 = vmatprep.mubr.msk.f32.mxu0 %vm273_vm0, %v274_v8  ;;  %254 = vmatprep.mubr.msk.f32.mxu1 %vm273_vm0, %v274_v8 }
   0x3   :  { %v264_v9 = vpack.c.bf16 %v210_v5, %v209_v3  ;;  %v211_v10 = vld [vmem:[%s340_s0 + $0x38] sm:$0xff]  ;;  %v212_v11 = vld [vmem:[%s340_s0 + $0x40] sm:$0xff]  ;;  %v261_v12 = vpack.c.bf16 %v18_v7, %v17_v6  ;;  %v213_v15 = vld [vmem:[%s340_s0 + $0x48] sm:$0x1f] }
   0x4   :  { %259 = vmatpush3.bf16.msra.mxu0 %v258_v4  ;;  %v267_v13 = vpack.c.bf16 %v212_v11, %v211_v10  ;;  %v19_v14 = vld [vmem:[%s340_s0 + $0x20] sm:$0x1f] }
   0x5   :  { %265 = vmatpush3.bf16.msra.mxu1 %v264_v9  ;;  %260 = vmatprep.subr.bf16.mxu0 %v272_v0  ;;  %v14_v16 = vld [vmem:[%s341_s1] sm:$0xff] }
   0x6   :  { %266 = vmatprep.subr.bf16.mxu1 %v272_v0  ;;  %v208_v21 = vld [vmem:[%s342_s2] ss:$0 sm:$0xff]  ;;  %v217_v25 = vld [vmem:[%s342_s2 + $0x1] ss:$0 sm:$0xff] }
   0x8   :  { %262 = vmatpush3.bf16.msra.mxu0 %v261_v12 }
   0x9   :  { %268 = vmatpush3.bf16.msra.mxu1 %v267_v13  ;;  %239 = vmatprep.subr.mxu0 %v274_v8 }
   0xa   :  { %252 = vmatprep.subr.mxu1 %v274_v8 }
   0xc   :  { %240 = vmatpush3.msk.msra.mxu0 %vm24_vm1, %v19_v14 }
   0xd   :  { %253 = vmatpush3.msk.msra.mxu1 %vm24_vm1, %v213_v15  ;;  %242 = vmatmul.mubr.msk.f32.vlgmr.msra.gmra.mrb[0].mxu0 %vm20_vm2, %v14_v16 }
   0xe   :  { %255 = vmatmul.mubr.msk.f32.vlgmr.msra.gmra.mrb[0].mxu1 %vm20_vm2, %v14_v16 }
  0xe0   :  { %v94_v17 = vpop.f32.mrb[0].mxu0 }
  0xe1   :  { %v98_v18 = vmax.f32 %v94_v17, 0.0  ;;  %v185_v19 = vpop.f32.mrb[0].mxu1  ;;  %v243_v20 = vpop.f32.mrb[1].mxu0 }
  0xe2   :  { %v189_v22 = vmax.f32 %v185_v19, 0.0  ;;  %v256_v23 = vpop.f32.mrb[1].mxu1 }
  0xe3   :  { %v99_v24 = vmin.f32 %v98_v18, 20.0 }
  0xe4   :  { %v190_v26 = vmin.f32 %v189_v22, 20.0 }
  0xe5   :  { %v107_v27 = vmul.f32 %v208_v21, %v99_v24 }
  0xe6   :  { %v199_v28 = vmul.f32 %v217_v25, %v190_v26 }
  0xe7   :  { %109 = vst.msk [vmem:[%s343_s3] sm:$0xff] %vm108_vm3, %v107_v27 }
  0xe8   :  { %218 = vst.msk [vmem:[%s343_s3 + $0x8] sm:$0xff] %vm108_vm3, %v199_v28 }

</bundles_post_ra>
